<compile_context>
chip_gen: v5e
topology: v5e:2x2
jax: 0.10.0
libtpu: 0.0.40
codegen_flags: <defaults>
</compile_context>

<pallas_src>
import math

import jax
import jax.numpy as jnp
from jax import lax
from jax.experimental import pallas as pl
from jax.experimental.pallas import tpu as pltpu


def _round_up(x: int, m: int) -> int:
    return ((x + m - 1) // m) * m


def _make_embed_kernel(tile_rows: int, pack: int, vocab_size: int,
                       d_out: int, scale: float):
    def embed_kernel(targets_ref, table_hbm, out_ref, table_vmem):
        # targets_ref: (tile_rows, pack) int32; targets[r, j] = j*vocab + id
        # table_hbm:   (pack*vocab, d_out) f32 block-diagonal packed table (HBM)
        # out_ref:     (tile_rows, d_out) f32 lane-dense output block
        # table_vmem:  persistent VMEM scratch holding the packed table

        # Copy the table into VMEM exactly once.  Grid is sequential
        # ("arbitrary"), so step 0 runs first; scratch persists across steps.
        @pl.when(pl.program_id(0) == 0)
        def _():
            pltpu.sync_copy(table_hbm, table_vmem)

        tgt = targets_ref[...]                                  # (tile_rows, pack)
        iota = lax.broadcasted_iota(jnp.int32,
                                    (tile_rows, pack * vocab_size), 1)
        onehot = (iota == tgt[:, 0:1])
        for j in range(1, pack):                                # static unroll (pack<=4)
            onehot = jnp.logical_or(onehot, iota == tgt[:, j:j + 1])
        onehot = onehot.astype(jnp.float32)

        # One MXU matmul selects all tile_rows*pack embedding rows at once.
        # HIGHEST precision keeps the f32 table exact through the MXU pass
        # decomposition (the one-hot lhs is exactly representable), so the
        # result matches the torch gather bit-for-bit up to f32 rounding.
        rows = jnp.dot(onehot, table_vmem[...],
                       preferred_element_type=jnp.float32,
                       precision=lax.Precision.HIGHEST)
        out_ref[...] = rows * scale                             # scale stays in-kernel

    return embed_kernel


def input_embedding(x_ids: jax.Array, table: jax.Array, *, tile_t: int = 1024):
    """x_ids: (B, S) integer token ids; table: (vocab, d_model).

    Returns (B, S, d_model) float32 = table[x_ids] * sqrt(d_model).
    """
    B, S = x_ids.shape
    vocab_size, d_model = table.shape
    tokens = B * S
    scale = float(math.sqrt(float(d_model)))

    # Output dtype is explicit (nn.Embedding weights / output are f32).
    table = table.astype(jnp.float32)

    # Pack P tokens per 128-lane output row when d_model divides 128 so every
    # kernel store is a full-lane, unmasked vst.
    pack = 128 // d_model if (d_model < 128 and 128 % d_model == 0) else 1
    d_out = pack * d_model

    # Token tile: multiple of 8*pack (sublane alignment of the row tile),
    # large by default to amortize the ~0.35us per-grid-step overhead.
    step = 8 * pack
    tile_t = max(step, min(_round_up(tokens, step), _round_up(tile_t, step)))
    tokens_padded = _round_up(tokens, tile_t)
    tile_rows = tile_t // pack
    num_rows = tokens_padded // pack

    # Index prep (cheap int ops).  Clamp OOB ids (PyTorch would raise; clamping
    # guarantees no out-of-table selection).  Padding tokens select row 0 and
    # are sliced off at the end -- keep that slice.
    ids = jnp.clip(x_ids.reshape(tokens).astype(jnp.int32), 0, vocab_size - 1)
    if tokens_padded != tokens:
        ids = jnp.pad(ids, (0, tokens_padded - tokens))
    targets = ids.reshape(num_rows, pack) + \
        jnp.arange(pack, dtype=jnp.int32) * vocab_size

    # Block-diagonal packed table: row j*vocab + v holds table[v] in lanes
    # [j*d_model, (j+1)*d_model).  (pack == 1 -> the original table.)
    if pack == 1:
        table_packed = table
    else:
        eye = jnp.eye(pack, dtype=jnp.float32)
        table_packed = jnp.einsum("jk,vc->jvkc", eye, table).reshape(
            pack * vocab_size, d_out)

    kernel = _make_embed_kernel(tile_rows, pack, vocab_size, d_out, scale)

    # VMEM budget: ONE table copy (manual scratch, not double-buffered) +
    # double-buffered in/out blocks + one-hot intermediates + slack.
    lanes = lambda n: _round_up(n, 128)
    table_bytes = pack * vocab_size * lanes(d_out) * 4
    out_bytes = tile_rows * lanes(d_out) * 4
    tgt_bytes = tile_rows * lanes(pack) * 4
    onehot_bytes = tile_rows * lanes(pack * vocab_size) * 4
    needed = table_bytes + 2 * out_bytes + 2 * tgt_bytes + 3 * onehot_bytes + (4 << 20)
    try:
        vmem_cap = pltpu.get_tpu_info().vmem_capacity_bytes
    except Exception:
        vmem_cap = 64 << 20  # v7x per-TC capacity (smallest in the fleet)
    vmem_limit = int(min(max(needed, 32 << 20), vmem_cap))
    # TODO(synk): if `needed` exceeds vmem_cap, fall back to the HBM row-gather
    #             (make_async_copy) path instead of the one-hot matmul.

    out_flat = pl.pallas_call(
        kernel,
        out_shape=jax.ShapeDtypeStruct((num_rows, d_out), jnp.float32),
        grid_spec=pltpu.PrefetchScalarGridSpec(
            num_scalar_prefetch=0,
            grid=(num_rows // tile_rows,),
            in_specs=[
                pl.BlockSpec((tile_rows, pack), lambda i: (i, 0)),
                pl.BlockSpec(memory_space=pl.ANY),   # packed table stays in HBM
            ],
            out_specs=pl.BlockSpec((tile_rows, d_out), lambda i: (i, 0)),
            scratch_shapes=[
                pltpu.VMEM((pack * vocab_size, d_out), jnp.float32),
            ],
        ),
        compiler_params=pltpu.CompilerParams(
            # "arbitrary": the copy-table-at-step-0 guard requires sequential
            # grid order, and on v7x it avoids each TC holding its own full
            # table copy; parallel-vs-arbitrary is a measured no-op on v5e/v6e.
            dimension_semantics=("arbitrary",),
            vmem_limit_bytes=vmem_limit,
        ),
    )(targets, table_packed)

    # Unpack lanes back to tokens; the slice drops padding tokens (keep it!).
    return out_flat.reshape(num_rows * pack, d_model)[:tokens].reshape(B, S, d_model)


if __name__ == "__main__":
    # Small, deterministic setup consistent with the module:
    #   vocab_size=64, d_model=32, batch=2, seq=8
    vocab_size = 64
    d_model = 32
    B, S = 2, 8

    key = jax.random.PRNGKey(0)
    k_tab, k_ids = jax.random.split(key)

    # Deterministic "parameter" init (nn.Embedding weight ~ N(0, 1)).
    table = jax.random.normal(k_tab, (vocab_size, d_model), dtype=jnp.float32)
    x_ids = jax.random.randint(k_ids, (B, S), 0, vocab_size, dtype=jnp.int32)

    out = input_embedding(x_ids, table)
    out = jax.block_until_ready(out)

    # Reference check (plain JAX gather + scale).
    ref = table[x_ids] * jnp.sqrt(jnp.float32(d_model))
    assert out.shape == (B, S, d_model)
    assert jnp.allclose(out, ref, atol=1e-4, rtol=1e-4), \
        float(jnp.max(jnp.abs(out - ref)))

    print("KERNEL_OK")
</pallas_src>

<mosaic_0001>
module attributes {stable_mosaic.version = 11 : i64} {
  func.func @embed_kernel(%arg0: i32, %arg1: memref<8x4xi32, #tpu.memory_space<vmem>>, %arg2: memref<256x128xf32, #tpu.memory_space<any>>, %arg3: memref<8x128xf32, #tpu.memory_space<vmem>>, %arg4: memref<256x128xf32, #tpu.memory_space<vmem>>) attributes {dimension_semantics = [#tpu.dimension_semantics<arbitrary>], iteration_bounds = array<i64: 1>, scalar_prefetch = 0 : i64, scratch_operands = 1 : i64, tpu.core_type = #tpu.core_type<tc>, window_params = [{transform_indices = @transform_0, window_bounds = array<i64: 8, 4>}, {}, {transform_indices = @transform_2, window_bounds = array<i64: 8, 128>}]} {
    %c0_i32 = arith.constant 0 : i32
    %0 = arith.cmpi eq, %arg0, %c0_i32 : i32
    %1 = arith.extui %0 : i1 to i32
    %c0_i32_0 = arith.constant 0 : i32
    %2 = arith.cmpi ne, %1, %c0_i32_0 : i32
    scf.if %2 {
      "tpu.region"() ({
        %27 = tpu.sem_alloc : memref<!tpu.dma_semaphore, #tpu.memory_space<semaphore_mem>>
        tpu.enqueue_dma source(%arg2 : memref<256x128xf32, #tpu.memory_space<any>>) target(%arg4 : memref<256x128xf32, #tpu.memory_space<vmem>>) target_semaphore(%27 : memref<!tpu.dma_semaphore, #tpu.memory_space<semaphore_mem>>)
        tpu.wait_dma2 semaphore(%27 : memref<!tpu.dma_semaphore, #tpu.memory_space<semaphore_mem>>) src(%arg2 : memref<256x128xf32, #tpu.memory_space<any>>) dst(%arg4 : memref<256x128xf32, #tpu.memory_space<vmem>>)
        tpu.yield
      }) : () -> ()
    } else {
    }
    %c0 = arith.constant 0 : index
    %c0_1 = arith.constant 0 : index
    %3 = vector.load %arg1[%c0, %c0_1] : memref<8x4xi32, #tpu.memory_space<vmem>>, vector<8x4xi32>
    %4 = tpu.iota {dimensions = array<i32: 1>} : vector<8x256xi32>
    %5 = vector.extract_strided_slice %3 {offsets = [0, 0], sizes = [8, 1], strides = [1, 1]} : vector<8x4xi32> to vector<8x1xi32>
    %6 = vector.broadcast %5 : vector<8x1xi32> to vector<8x256xi32>
    %7 = arith.cmpi eq, %4, %6 : vector<8x256xi32>
    %8 = vector.extract_strided_slice %3 {offsets = [0, 1], sizes = [8, 1], strides = [1, 1]} : vector<8x4xi32> to vector<8x1xi32>
    %9 = vector.broadcast %8 : vector<8x1xi32> to vector<8x256xi32>
    %10 = arith.cmpi eq, %4, %9 : vector<8x256xi32>
    %11 = arith.ori %7, %10 : vector<8x256xi1>
    %12 = vector.extract_strided_slice %3 {offsets = [0, 2], sizes = [8, 1], strides = [1, 1]} : vector<8x4xi32> to vector<8x1xi32>
    %13 = vector.broadcast %12 : vector<8x1xi32> to vector<8x256xi32>
    %14 = arith.cmpi eq, %4, %13 : vector<8x256xi32>
    %15 = arith.ori %11, %14 : vector<8x256xi1>
    %16 = vector.extract_strided_slice %3 {offsets = [0, 3], sizes = [8, 1], strides = [1, 1]} : vector<8x4xi32> to vector<8x1xi32>
    %17 = vector.broadcast %16 : vector<8x1xi32> to vector<8x256xi32>
    %18 = arith.cmpi eq, %4, %17 : vector<8x256xi32>
    %19 = arith.ori %15, %18 : vector<8x256xi1>
    %20 = arith.extui %19 : vector<8x256xi1> to vector<8x256xi32>
    %21 = arith.sitofp %20 : vector<8x256xi32> to vector<8x256xf32>
    %c0_2 = arith.constant 0 : index
    %c0_3 = arith.constant 0 : index
    %22 = vector.load %arg4[%c0_2, %c0_3] : memref<256x128xf32, #tpu.memory_space<vmem>>, vector<256x128xf32>
    %cst = arith.constant dense<0.000000e+00> : vector<8x128xf32>
    %23 = tpu.matmul %21, %22, %cst {dimension_numbers = #tpu.dot_dimension_numbers<[1], [0], [0], [1], [0, 0, 1, 1], [], []>, precision = #tpu.contract_precision<fp32>} : vector<8x256xf32>, vector<256x128xf32>, vector<8x128xf32> -> vector<8x128xf32>
    %cst_4 = arith.constant 5.65685415 : f32
    %24 = vector.broadcast %cst_4 : f32 to vector<8x128xf32>
    %25 = arith.mulf %23, %24 : vector<8x128xf32>
    %c0_5 = arith.constant 0 : index
    %c0_6 = arith.constant 0 : index
    %26 = vector.load %arg3[%c0_5, %c0_6] : memref<8x128xf32, #tpu.memory_space<vmem>>, vector<8x128xf32>
    tpu.vector_store %arg3[%c0_5, %c0_6], %25 {strides = array<i32>} : memref<8x128xf32, #tpu.memory_space<vmem>>, vector<8x128xf32>,
    return
  }
  func.func @transform_0(%arg0: i32) -> (i32, i32) {
    %c0_i32 = arith.constant 0 : i32
    %c0_i32_0 = arith.constant 0 : i32
    return %arg0, %c0_i32 : i32, i32
  }
  func.func @transform_2(%arg0: i32) -> (i32, i32) {
    %c0_i32 = arith.constant 0 : i32
    %c0_i32_0 = arith.constant 0 : i32
    return %arg0, %c0_i32 : i32, i32
  }
}

</mosaic_0001>

<bundles_post_ra>
// kernel: tpu_custom_call.1
= control target key start
LH: loop header
LB: loop body
LE: loop exit
PB: predicated region body
PF: predicated region fallthrough
CT: control target
= control target key end

     0   :  { %7 = vsyncpa [#allocation4], 0  ;;  %s1418_s0 = inlined_call_operand.vmem [shape: s32[8,4], index: 0, kind: input, shape index: {}]   ;;  %s1419_s1 = inlined_call_operand.hbm [shape: f32[256,128], index: 1, kind: input, shape index: {}]   ;;  %s1420_s2 = inlined_call_operand.hbm [shape: f32[8,128], index: 2, kind: output, shape index: {}]  }
   0x1   :  { %s21_s11 = sshll.u32 %s1419_s1, 4  ;;  %s869_s12 = smov [#allocation2]   ;;  %s22_s11 = int_to_ptr.hbm [resolvable:$true] %s21_s11 }
   0x2   :  { %s23_s13 = sshll.u32 %s869_s12, 4  ;;  %s24_s13 = int_to_ptr.vmem [resolvable:$true] %s23_s13 }
   0x3   :  { %26 = dma.hbm_to_vmem [thread:$0]  %s22_s11, 4096, %s24_s13, [#allocation5] }
   0x4   :  { %865 = dma.done.wait [#allocation5], 4096 }
   0x5   :  { %866 = vsyncadd [#allocation5], 4294963200  ;;  %v30_v0 = vld [vmem:[%s1418_s0] sm:$0xff]  ;;  %v79_v1 = vld [vmem:[#allocation2 + $0x78] sm:$0xff]  ;;  %v870_v2 = vmov 0   ;;  %v871_v3 = vmov 2  }
   0x6   :  { %812 = vset.pattern.permute.xlu0 %v870_v2  ;;  %814 = vset.pattern.permute.xlu1 %v871_v3  ;;  %v898_v4 = vand.u32 4294901760, %v79_v1  ;;  %v78_v5 = vld [vmem:[#allocation2 + $0x70] sm:$0xff]  ;;  %v77_v6 = vld [vmem:[#allocation2 + $0x68] sm:$0xff]  ;;  %v76_v7 = vld [vmem:[#allocation2 + $0x60] sm:$0xff]  ;;  %v872_v39 = vmov 1   ;;  %v1426_v40 = vmov 3  }
   0x7   :  { %35 = vperm.xlu0 %812, %v30_v0   ;;  %47 = vperm.xlu1 %814, %v30_v0   ;;  %v900_v8 = vand.u32 4294901760, %v78_v5  ;;  %v902_v9 = vand.u32 4294901760, %v77_v6  ;;  %v904_v10 = vand.u32 4294901760, %v76_v7  ;;  %v75_v11 = vld [vmem:[#allocation2 + $0x58] sm:$0xff]  ;;  %v74_v12 = vld [vmem:[#allocation2 + $0x50] sm:$0xff]  ;;  %v73_v13 = vld [vmem:[#allocation2 + $0x48] sm:$0xff] }
   0x8   :  { %v907_v14 = vsub.f32 %v79_v1, %v898_v4  ;;  %293 = vmatpush.msra.mxu3 %v898_v4  ;;  %v910_v15 = vand.u32 4294901760, %v75_v11  ;;  %97 = vmatpush.msra.mxu0 %v898_v4  ;;  %v913_v16 = vand.u32 4294901760, %v74_v12  ;;  %v915_v17 = vand.u32 4294901760, %v73_v13  ;;  %v72_v18 = vld [vmem:[#allocation2 + $0x40] sm:$0xff]  ;;  %v71_v34 = vld [vmem:[#allocation2 + $0x38] sm:$0xff]  ;;  %v70_v37 = vld [vmem:[#allocation2 + $0x30] sm:$0xff] }
   0x9   :  { %v918_v19 = vsub.f32 %v78_v5, %v900_v8  ;;  %v921_v20 = vsub.f32 %v77_v6, %v902_v9  ;;  %v924_v21 = vsub.f32 %v76_v7, %v904_v10  ;;  %v932_v24 = vand.u32 4294901760, %v72_v18  ;;  %v69_v38 = vld [vmem:[#allocation2 + $0x28] sm:$0xff]  ;;  %v68_v46 = vld [vmem:[#allocation2 + $0x20] sm:$0xff]  ;;  %v67_v51 = vld [vmem:[#allocation2 + $0x18] sm:$0xff]  ;;  %s876_s0 = smov [#allocation3]   ;;  %s787_s18 = sshll.u32 %s1420_s2, 4  ;;  %s788_s18 = int_to_ptr.hbm [resolvable:$true] %s787_s18 }
   0xa   :  { %v139_v22 = vand.u32 4294901760, %v907_v14  ;;  %240 = vmatpush.msra.mxu2 %v907_v14  ;;  %295 = vmatpush.msra.mxu3 %v900_v8  ;;  %v930_v23 = vsub.f32 %v75_v11, %v910_v15  ;;  %v938_v28 = vsub.f32 %v74_v12, %v913_v16  ;;  %v947_v30 = vsub.f32 %v73_v13, %v915_v17  ;;  %v66_v58 = vld [vmem:[#allocation2 + $0x10] sm:$0xff]  ;;  %v64_v7 = vld [vmem:[#allocation2] sm:$0xff]  ;;  %v95_v11 = vld [vmem:[#allocation2 + $0xf8] sm:$0xff]  ;;  %s785_s1 = sshll.u32 %s876_s0, 4  ;;  %s786_s1 = int_to_ptr.vmem [resolvable:$true] %s785_s1 }
   0xb   :  { %v145_v25 = vand.u32 4294901760, %v918_v19  ;;  %v151_v26 = vand.u32 4294901760, %v921_v20  ;;  %v1433_v27 = vand.u32 4294901760, %v924_v21  ;;  %99 = vmatpush.msra.mxu0 %v900_v8  ;;  %v960_v36 = vsub.f32 %v72_v18, %v932_v24  ;;  %v94_v18 = vld [vmem:[#allocation2 + $0xf0] sm:$0xff] }
   0xc   :  { %v140_v29 = vsub.f32 %v907_v14, %v139_v22  ;;  %243 = vmatpush.msra.mxu2 %v918_v19  ;;  %297 = vmatpush.msra.mxu3 %v902_v9  ;;  %v1430_v33 = vand.u32 4294901760, %v930_v23  ;;  %v1429_v43 = vand.u32 4294901760, %v938_v28  ;;  %v1427_v44 = vand.u32 4294901760, %v947_v30 }
   0xd   :  { %v146_v31 = vsub.f32 %v918_v19, %v145_v25  ;;  %v152_v32 = vsub.f32 %v921_v20, %v151_v26  ;;  %101 = vmatpush.msra.mxu0 %v902_v9  ;;  %v158_v42 = vsub.f32 %v924_v21, %v1433_v27  ;;  %v968_v45 = vand.u32 4294901760, %v71_v34 }
   0xe   :  { %v141_v35 = vand.u32 4294901760, %v140_v29  ;;  %246 = vmatpush.msra.mxu2 %v921_v20  ;;  %299 = vmatpush.msra.mxu3 %v904_v10  ;;  %v164_v48 = vsub.f32 %v930_v23, %v1430_v33  ;;  %v974_v49 = vand.u32 4294901760, %v70_v37  ;;  %v976_v50 = vand.u32 4294901760, %v69_v38  ;;  %v93_v29 = vld [vmem:[#allocation2 + $0xe8] sm:$0xff] }
   0xf   :  { %813 = vset.pattern.permute.xlu0 %v872_v39  ;;  %815 = vset.pattern.permute.xlu1 %v1426_v40  ;;  %v147_v41 = vand.u32 4294901760, %v146_v31  ;;  %v153_v47 = vand.u32 4294901760, %v152_v32  ;;  %v1425_v52 = vand.u32 4294901760, %v960_v36  ;;  %v982_v53 = vsub.f32 %v71_v34, %v968_v45 }
  0x10   :  { %40 = vperm.xlu0 %813, %v30_v0   ;;  %54 = vperm.xlu1 %815, %v30_v0   ;;  %v159_v54 = vand.u32 4294901760, %v158_v42  ;;  %v170_v55 = vsub.f32 %v938_v28, %v1429_v43  ;;  %v989_v56 = vsub.f32 %v70_v37, %v974_v49  ;;  %v991_v57 = vand.u32 4294901760, %v68_v46  ;;  %v65_v0 = vld [vmem:[#allocation2 + $0x8] sm:$0xff] }
  0x11   :  { %142 = vmatpush.msra.mxu1 %v141_v35  ;;  %249 = vmatpush.msra.mxu2 %v924_v21  ;;  %v995_v59 = vand.u32 4294901760, %v67_v51  ;;  %v165_v60 = vand.u32 4294901760, %v164_v48  ;;  %v176_v61 = vsub.f32 %v947_v30, %v1427_v44  ;;  %v1423_v62 = vand.u32 4294901760, %v982_v53 }
  0x12   :  { %301 = vmatpush.msra.mxu3 %v910_v15  ;;  %103 = vmatpush.msra.mxu0 %v904_v10  ;;  %v1003_v63 = vsub.f32 %v69_v38, %v976_v50  ;;  %v182_v1 = vsub.f32 %v960_v36, %v1425_v52  ;;  %v1010_v2 = vand.u32 4294901760, %v66_v58  ;;  %v171_v3 = vand.u32 4294901760, %v170_v55 }
  0x13   :  { %148 = vmatpush.msra.mxu1 %v147_v41  ;;  %252 = vmatpush.msra.mxu2 %v930_v23  ;;  %v1422_v5 = vand.u32 4294901760, %v989_v56  ;;  %v1015_v6 = vsub.f32 %v68_v46, %v991_v57  ;;  %v1020_v12 = vsub.f32 %v67_v51, %v995_v59  ;;  %v1022_v13 = vand.u32 4294901760, %v65_v0  ;;  %v92_v41 = vld [vmem:[#allocation2 + $0xe0] sm:$0xff] }
  0x14   :  { %303 = vmatpush.msra.mxu3 %v913_v16  ;;  %105 = vmatpush.msra.mxu0 %v910_v15  ;;  %v177_v31 = vand.u32 4294901760, %v176_v61  ;;  %v188_v32 = vsub.f32 %v982_v53, %v1423_v62  ;;  %v1421_v34 = vand.u32 4294901760, %v1003_v63  ;;  %v183_v35 = vand.u32 4294901760, %v182_v1 }
  0x15   :  { %154 = vmatpush.msra.mxu1 %v153_v47  ;;  %255 = vmatpush.msra.mxu2 %v938_v28  ;;  %v1032_v37 = vsub.f32 %v66_v58, %v1010_v2  ;;  %v1034_v38 = vand.u32 4294901760, %v64_v7  ;;  %v1036_v39 = vand.u32 4294901760, %v95_v11  ;;  %v194_v42 = vsub.f32 %v989_v56, %v1422_v5  ;;  %v91_v58 = vld [vmem:[#allocation2 + $0xd8] sm:$0xff] }
  0x16   :  { %305 = vmatpush.msra.mxu3 %v915_v17  ;;  %107 = vmatpush.msra.mxu0 %v913_v16  ;;  %v1424_v46 = vand.u32 4294901760, %v1015_v6  ;;  %v1043_v47 = vand.u32 4294901760, %v94_v18  ;;  %v1045_v48 = vand.u32 4294901760, %v93_v29  ;;  %v1428_v51 = vand.u32 4294901760, %v1020_v12 }
  0x17   :  { %160 = vmatpush.msra.mxu1 %v159_v54  ;;  %258 = vmatpush.msra.mxu2 %v947_v30  ;;  %v1051_v54 = vsub.f32 %v65_v0, %v1022_v13  ;;  %v1054_v55 = vsub.f32 %v95_v11, %v1036_v39  ;;  %v200_v61 = vsub.f32 %v1003_v63, %v1421_v34  ;;  %v195_v34 = vand.u32 4294901760, %v194_v42 }
  0x18   :  { %307 = vmatpush.msra.mxu3 %v932_v24  ;;  %109 = vmatpush.msra.mxu0 %v915_v17  ;;  %v1061_v1 = vsub.f32 %v94_v18, %v1043_v47  ;;  %v1068_v0 = vsub.f32 %v64_v7, %v1034_v38  ;;  %v206_v18 = vsub.f32 %v1015_v6, %v1424_v46  ;;  %v1432_v5 = vand.u32 4294901760, %v1032_v37 }
  0x19   :  { %166 = vmatpush.msra.mxu1 %v165_v60  ;;  %261 = vmatpush.msra.mxu2 %v960_v36  ;;  %v189_v60 = vand.u32 4294901760, %v188_v32  ;;  %v1431_v11 = vand.u32 4294901760, %v1054_v55  ;;  %v90_v32 = vld [vmem:[#allocation2 + $0xd0] sm:$0xff]  ;;  %v1079_v62 = vand.u32 4294901760, %v91_v58  ;;  %v1435_v7 = vand.u32 4294901760, %v1051_v54 }
  0x1a   :  { %309 = vmatpush.msra.mxu3 %v968_v45  ;;  %111 = vmatpush.msra.mxu0 %v932_v24  ;;  %v201_v42 = vand.u32 4294901760, %v200_v61  ;;  %v212_v46 = vsub.f32 %v1020_v12, %v1428_v51  ;;  %v1092_v40 = vand.u32 4294901760, %v90_v32  ;;  %v1437_v44 = vand.u32 4294901760, %v1068_v0 }
  0x1b   :  { %172 = vmatpush.msra.mxu1 %v171_v3  ;;  %264 = vmatpush.msra.mxu2 %v982_v53  ;;  %v1063_v3 = vand.u32 4294901760, %v92_v41  ;;  %v207_v51 = vand.u32 4294901760, %v206_v18  ;;  %v1106_v43 = vsub.f32 %v91_v58, %v1079_v62  ;;  %v1438_v19 = vand.u32 4294901760, %v924_v21 }
  0x1c   :  { %311 = vmatpush.msra.mxu3 %v974_v49  ;;  %113 = vmatpush.msra.mxu0 %v968_v45  ;;  %v213_v18 = vand.u32 4294901760, %v212_v46  ;;  %v1440_v20 = vand.u32 4294901760, %v938_v28  ;;  %v1442_v21 = vmov 3   ;;  %v1450_v28 = vand.u32 4294901760, %v1051_v54 }
  0x1d   :  { %178 = vmatpush.msra.mxu1 %v177_v31  ;;  %267 = vmatpush.msra.mxu2 %v989_v56  ;;  %v1072_v31 = vsub.f32 %v93_v29, %v1045_v48  ;;  %v1434_v29 = vand.u32 4294901760, %v1061_v1  ;;  %v1090_v52 = vsub.f32 %v92_v41, %v1063_v3  ;;  %v218_v41 = vsub.f32 %v1032_v37, %v1432_v5 }
  0x1e   :  { %313 = vmatpush.msra.mxu3 %v976_v50  ;;  %115 = vmatpush.msra.mxu0 %v974_v49  ;;  %v1121_v5 = vsub.f32 %v90_v32, %v1092_v40  ;;  %v504_v32 = vand.u32 4294901760, %v1106_v43 }
  0x1f   :  { %184 = vmatpush.msra.mxu1 %v183_v35  ;;  %270 = vmatpush.msra.mxu2 %v1003_v63  ;;  %v89_v35 = vld [vmem:[#allocation2 + $0xc8] sm:$0xff]  ;;  %v1436_v61 = vand.u32 4294901760, %v1072_v31  ;;  %v498_v58 = vand.u32 4294901760, %v1090_v52 }
  0x20   :  { %315 = vmatpush.msra.mxu3 %v991_v57  ;;  %117 = vmatpush.msra.mxu0 %v976_v50  ;;  %v1108_v33 = vand.u32 4294901760, %v89_v35 }
  0x21   :  { %190 = vmatpush.msra.mxu1 %v189_v60  ;;  %273 = vmatpush.msra.mxu2 %v1015_v6  ;;  %v481_v60 = vsub.f32 %v1054_v55, %v1431_v11  ;;  %v224_v11 = vsub.f32 %v1051_v54, %v1435_v7  ;;  %v493_v46 = vsub.f32 %v1072_v31, %v1436_v61 }
  0x22   :  { %317 = vmatpush.msra.mxu3 %v995_v59  ;;  %119 = vmatpush.msra.mxu0 %v991_v57  ;;  %v1134_v7 = vsub.f32 %v89_v35, %v1108_v33 }
  0x23   :  { %196 = vmatpush.msra.mxu1 %v195_v34  ;;  %276 = vmatpush.msra.mxu2 %v1020_v12  ;;  %v487_v34 = vsub.f32 %v1061_v1, %v1434_v29  ;;  %v482_v27 = vand.u32 4294901760, %v481_v60  ;;  %v230_v29 = vsub.f32 %v1068_v0, %v1437_v44  ;;  %v225_v61 = vand.u32 4294901760, %v224_v11 }
  0x24   :  { %319 = vmatpush.msra.mxu3 %v1010_v2  ;;  %121 = vmatpush.msra.mxu0 %v995_v59  ;;  %v494_v35 = vand.u32 4294901760, %v493_v46  ;;  %v505_v11 = vsub.f32 %v1106_v43, %v504_v32 }
  0x25   :  { %202 = vmatpush.msra.mxu1 %v201_v42  ;;  %279 = vmatpush.msra.mxu2 %v1032_v37  ;;  %v219_v42 = vand.u32 4294901760, %v218_v41  ;;  %v488_v60 = vand.u32 4294901760, %v487_v34  ;;  %v510_v41 = vand.u32 4294901760, %v1121_v5  ;;  %v231_v44 = vand.u32 4294901760, %v230_v29 }
  0x26   :  { %321 = vmatpush.msra.mxu3 %v1022_v13  ;;  %123 = vmatpush.msra.mxu0 %v1010_v2  ;;  %v516_v34 = vand.u32 4294901760, %v1134_v7  ;;  %v506_v29 = vand.u32 4294901760, %v505_v11 }
  0x27   :  { %208 = vmatpush.msra.mxu1 %v207_v51  ;;  %282 = vmatpush.msra.mxu2 %v1051_v54  ;;  %v499_v51 = vsub.f32 %v1090_v52, %v498_v58 }
  0x28   :  { %323 = vmatpush.msra.mxu3 %v1034_v38  ;;  %125 = vmatpush.msra.mxu0 %v1022_v13 }
  0x29   :  { %214 = vmatpush.msra.mxu1 %v213_v18  ;;  %285 = vmatpush.msra.mxu2 %v1068_v0  ;;  %v500_v18 = vand.u32 4294901760, %v499_v51 }
  0x2a   :  { %483 = vmatpush.msrb.mxu3 %v482_v27  ;;  %127 = vmatpush.msra.mxu0 %v1034_v38  ;;  %v511_v27 = vsub.f32 %v1121_v5, %v510_v41 }
  0x2b   :  { %438 = vmatpush.msrb.mxu2 %v1036_v39  ;;  %220 = vmatpush.msra.mxu1 %v219_v42 }
  0x2c   :  { %489 = vmatpush.msrb.mxu3 %v488_v60  ;;  %334 = vmatpush.msrb.mxu0 %v139_v22  ;;  %v512_v14 = vand.u32 4294901760, %v511_v27  ;;  %v88_v22 = vld [vmem:[#allocation2 + $0xc0] sm:$0xff]  ;;  %v83_v60 = vld [vmem:[#allocation2 + $0x98] sm:$0xff] }
  0x2d   :  { %440 = vmatpush.msrb.mxu2 %v1043_v47  ;;  %226 = vmatpush.msra.mxu1 %v225_v61  ;;  %v517_v61 = vsub.f32 %v1134_v7, %v516_v34 }
  0x2e   :  { %495 = vmatpush.msrb.mxu3 %v494_v35  ;;  %338 = vmatpush.msrb.mxu0 %v145_v25  ;;  %v1250_v35 = vand.u32 4294901760, %v83_v60 }
  0x2f   :  { %442 = vmatpush.msrb.mxu2 %v1045_v48  ;;  %232 = vmatpush.msra.mxu1 %v231_v44  ;;  %v518_v25 = vand.u32 4294901760, %v517_v61  ;;  %v82_v61 = vld [vmem:[#allocation2 + $0x90] sm:$0xff] }
  0x30   :  { %501 = vmatpush.msrb.mxu3 %v500_v18  ;;  %342 = vmatpush.msrb.mxu0 %v151_v26  ;;  %v1446_v26 = vand.u32 4294901760, %v1003_v63 }
  0x31   :  { %401 = vmatpush.msrb.mxu1 %v898_v4  ;;  %444 = vmatpush.msrb.mxu2 %v1063_v3  ;;  %v1439_v4 = vand.u32 4294901760, %v930_v23  ;;  %v1444_v23 = vand.u32 4294901760, %v982_v53 }
  0x32   :  { %507 = vmatpush.msrb.mxu3 %v506_v29  ;;  %346 = vmatpush.msrb.mxu0 %v1438_v19 }
  0x33   :  { %403 = vmatpush.msrb.mxu1 %v900_v8  ;;  %446 = vmatpush.msrb.mxu2 %v1079_v62  ;;  %v1175_v8 = vand.u32 4294901760, %v88_v22 }
  0x34   :  { %513 = vmatpush.msrb.mxu3 %v512_v14  ;;  %350 = vmatpush.msrb.mxu0 %v1439_v4  ;;  %v81_v4 = vld [vmem:[#allocation2 + $0x88] sm:$0xff] }
  0x35   :  { %405 = vmatpush.msrb.mxu1 %v902_v9  ;;  %448 = vmatpush.msrb.mxu2 %v1092_v40  ;;  %v1441_v9 = vand.u32 4294901760, %v947_v30  ;;  %v1451_v30 = vand.u32 4294901760, %v1068_v0 }
  0x36   :  { %519 = vmatpush.msrb.mxu3 %v518_v25  ;;  %354 = vmatpush.msrb.mxu0 %v1440_v20  ;;  %v1266_v25 = vsub.f32 %v83_v60, %v1250_v35 }
  0x37   :  { %407 = vmatpush.msrb.mxu1 %v904_v10  ;;  %450 = vmatpush.msrb.mxu2 %v1108_v33  ;;  %v1443_v10 = vand.u32 4294901760, %v960_v36  ;;  %v87_v36 = vld [vmem:[#allocation2 + $0xb8] sm:$0xff] }
  0x38   :  { %358 = vmatpush.msrb.mxu0 %v1441_v9  ;;  %816 = vset.pattern.permute.xlu0 %v1442_v21  ;;  %v1213_v44 = vand.u32 4294901760, %v87_v36  ;;  %v552_v9 = vand.u32 4294901760, %v1266_v25  ;;  %v1270_v21 = vand.u32 4294901760, %v81_v4 }
  0x39   :  { %409 = vmatpush.msrb.mxu1 %v910_v15  ;;  %452 = vmatpush.msrb.mxu2 %v1175_v8  ;;  %v1445_v15 = vand.u32 4294901760, %v989_v56 }
  0x3a   :  { %362 = vmatpush.msrb.mxu0 %v1443_v10  ;;  %v1223_v56 = vsub.f32 %v87_v36, %v1213_v44 }
  0x3b   :  { %411 = vmatpush.msrb.mxu1 %v913_v16  ;;  %v1447_v16 = vand.u32 4294901760, %v1015_v6  ;;  %454 = vmatpush.msrb.mxu2 %v1213_v44 }
  0x3c   :  { %366 = vmatpush.msrb.mxu0 %v1444_v23  ;;  %v528_v63 = vand.u32 4294901760, %v1223_v56  ;;  %v80_v23 = vld [vmem:[#allocation2 + $0x80] sm:$0xff] }
  0x3d   :  { %413 = vmatpush.msrb.mxu1 %v915_v17  ;;  %v1448_v17 = vand.u32 4294901760, %v1020_v12  ;;  %v84_v12 = vld [vmem:[#allocation2 + $0xa0] sm:$0xff] }
  0x3e   :  { %370 = vmatpush.msrb.mxu0 %v1445_v15  ;;  %v1240_v54 = vand.u32 4294901760, %v84_v12  ;;  %v553_v15 = vsub.f32 %v1266_v25, %v552_v9 }
  0x3f   :  { %415 = vmatpush.msrb.mxu1 %v932_v24  ;;  %v1449_v24 = vand.u32 4294901760, %v1032_v37  ;;  %v529_v37 = vsub.f32 %v1223_v56, %v528_v63 }
  0x40   :  { %374 = vmatpush.msrb.mxu0 %v1446_v26  ;;  %v1253_v11 = vsub.f32 %v84_v12, %v1240_v54 }
  0x41   :  { %417 = vmatpush.msrb.mxu1 %v968_v45  ;;  %v1216_v45 = vsub.f32 %v88_v22, %v1175_v8  ;;  %v530_v46 = vand.u32 4294901760, %v529_v37  ;;  %v1263_v22 = vand.u32 4294901760, %v82_v61 }
  0x42   :  { %378 = vmatpush.msrb.mxu0 %v1447_v16  ;;  %v546_v29 = vand.u32 4294901760, %v1253_v11  ;;  %v1280_v16 = vand.u32 4294901760, %v80_v23 }
  0x43   :  { %419 = vmatpush.msrb.mxu1 %v974_v49  ;;  %v86_v49 = vld [vmem:[#allocation2 + $0xb0] sm:$0xff]  ;;  %v1273_v10 = vsub.f32 %v82_v61, %v1263_v22 }
  0x44   :  { %382 = vmatpush.msrb.mxu0 %v1448_v17  ;;  %v1220_v53 = vand.u32 4294901760, %v86_v49  ;;  %v547_v19 = vsub.f32 %v1253_v11, %v546_v29  ;;  %v1283_v17 = vsub.f32 %v81_v4, %v1270_v21  ;;  %v1291_v36 = vsub.f32 %v80_v23, %v1280_v16 }
  0x45   :  { %421 = vmatpush.msrb.mxu1 %v976_v50  ;;  %v522_v50 = vand.u32 4294901760, %v1216_v45  ;;  %v558_v26 = vand.u32 4294901760, %v1273_v10  ;;  %v875_v23 = vmov 0.0  }
  0x46   :  { %386 = vmatpush.msrb.mxu0 %v1449_v24  ;;  %456 = vmatpush.msrb.mxu2 %v1220_v53  ;;  %v1233_v6 = vsub.f32 %v86_v49, %v1220_v53  ;;  %v548_v20 = vand.u32 4294901760, %v547_v19  ;;  %v554_v24 = vand.u32 4294901760, %v553_v15 }
  0x47   :  { %423 = vmatpush.msrb.mxu1 %v991_v57  ;;  %v85_v57 = vld [vmem:[#allocation2 + $0xa8] sm:$0xff] }
  0x48   :  { %390 = vmatpush.msrb.mxu0 %v1450_v28  ;;  %v559_v28 = vsub.f32 %v1273_v10, %v558_v26 }
  0x49   :  { %425 = vmatpush.msrb.mxu1 %v995_v59  ;;  %v523_v59 = vsub.f32 %v1216_v45, %v522_v50 }
  0x4a   :  { %394 = vmatpush.msrb.mxu0 %v1451_v30  ;;  %v564_v30 = vand.u32 4294901760, %v1283_v17  ;;  %v560_v49 = vand.u32 4294901760, %v559_v28 }
  0x4b   :  { %427 = vmatpush.msrb.mxu1 %v1010_v2  ;;  %v1230_v2 = vand.u32 4294901760, %v85_v57 }
  0x4d   :  { %429 = vmatpush.msrb.mxu1 %v1022_v13  ;;  %v524_v13 = vand.u32 4294901760, %v523_v59  ;;  %458 = vmatpush.msrb.mxu2 %v1230_v2  ;;  %v1243_v0 = vsub.f32 %v85_v57, %v1230_v2  ;;  %v565_v57 = vsub.f32 %v1283_v17, %v564_v30  ;;  %v570_v59 = vand.u32 4294901760, %v1291_v36 }
  0x4f   :  { %431 = vmatpush.msrb.mxu1 %v1034_v38  ;;  %v534_v38 = vand.u32 4294901760, %v1233_v6  ;;  %525 = vmatpush.msrb.mxu3 %v524_v13  ;;  %v540_v51 = vand.u32 4294901760, %v1243_v0  ;;  %v566_v12 = vand.u32 4294901760, %v565_v57  ;;  %v571_v13 = vsub.f32 %v1291_v36, %v570_v59 }
  0x50   :  { %460 = vmatpush.msrb.mxu2 %v1240_v54 }
  0x51   :  { %v535_v42 = vsub.f32 %v1233_v6, %v534_v38  ;;  %531 = vmatpush.msrb.mxu3 %v530_v46  ;;  %v541_v27 = vsub.f32 %v1243_v0, %v540_v51  ;;  %v572_v37 = vand.u32 4294901760, %v571_v13  ;;  %v31_v46 = vlaneseq }
  0x52   :  { %462 = vmatpush.msrb.mxu2 %v1250_v35 }
  0x53   :  { %v536_v18 = vand.u32 4294901760, %v535_v42  ;;  %v542_v14 = vand.u32 4294901760, %v541_v27 }
  0x54   :  { %464 = vmatpush.msrb.mxu2 %v1263_v22 }
  0x55   :  { %537 = vmatpush.msrb.mxu3 %v536_v18  ;;  %v32_v18 = vand.u32 127, %v31_v46  ;;  %v1457_v46 = vand.u32 4294901760, %v1061_v1 }
  0x56   :  { %466 = vmatpush.msrb.mxu2 %v1270_v21 }
  0x57   :  { %543 = vmatpush.msrb.mxu3 %v542_v14  ;;  %v33_v27 = vadd.s32 128, %v32_v18 }
  0x58   :  { %468 = vmatpush.msrb.mxu2 %v1280_v16 }
  0x59   :  { %549 = vmatpush.msrb.mxu3 %v548_v20  ;;  %v874_v20 = vmov 1.0  }
  0x5b   :  { %555 = vmatpush.msrb.mxu3 %v554_v24 }
  0x5d   :  { %561 = vmatpush.msrb.mxu3 %v560_v49 }
  0x5f   :  { %567 = vmatpush.msrb.mxu3 %v566_v12  ;;  %v1456_v12 = vand.u32 4294901760, %v1054_v55 }
  0x61   :  { %573 = vmatpush.msrb.mxu3 %v572_v37 }
  0x79   :  { %v36_v42 = vpop.permute.xlu0 %35  ;;  %v48_v60 = vpop.permute.xlu1 %47 }
  0x7a   :  { %vm37_vm0 = vcmp.eq.s32.totalorder %v32_v18, %v36_v42  ;;  %vm38_vm3 = vcmp.eq.s32.totalorder %v33_v27, %v36_v42  ;;  %vm49_vm5 = vcmp.eq.s32.totalorder %v32_v18, %v48_v60  ;;  %vm50_vm8 = vcmp.eq.s32.totalorder %v33_v27, %v48_v60 }
  0x82   :  { %v41_v61 = vpop.permute.xlu0 %40  ;;  %v55_v14 = vpop.permute.xlu1 %54 }
  0x83   :  { %vm42_vm1 = vcmp.eq.s32.totalorder %v32_v18, %v41_v61  ;;  %vm43_vm2 = vcmp.eq.s32.totalorder %v33_v27, %v41_v61  ;;  %vm56_vm7 = vcmp.eq.s32.totalorder %v32_v18, %v55_v14  ;;  %vm57_vm10 = vcmp.eq.s32.totalorder %v33_v27, %v55_v14 }
  0x84   :  { %vm44_vm4 = vmor %vm37_vm0, %vm42_vm1  ;;  %v1458_v18 = vand.u32 4294901760, %v1072_v31 }
  0x85   :  { %vm45_vm6 = vmor %vm38_vm3, %vm43_vm2 }
  0x86   :  { %vm51_vm9 = vmor %vm44_vm4, %vm49_vm5 }
  0x87   :  { %vm52_vm11 = vmor %vm45_vm6, %vm50_vm8 }
  0x88   :  { %vm1300_vm12 = vmor %vm51_vm9, %vm56_vm7 }
  0x89   :  { %vm1304_vm13 = vmor %vm52_vm11, %vm57_vm10  ;;  %798 = vmatmul.msk.f32.vlgmr.msra.gmra.mxu1 %vm1300_vm12, %v874_v20  ;;  %v796_v15 = vsel %vm1300_vm12, 1.0, %v875_v23 }
  0x8a   :  { %634 = vmatpush.msra.mxu1 %v1036_v39  ;;  %v797_v24 = vsel %vm1304_vm13, 1.0, %v875_v23  ;;  %v129_v28 = vsub.f32 %v796_v15, %v796_v15 }
  0x8b   :  { %v1316_v49 = vsub.f32 %v797_v24, %v797_v24 }
  0x8c   :  { %636 = vmatpush.msra.mxu1 %v1043_v47  ;;  %288 = vmatmul.f32.vlgmr.msra.gmra.mxu2 %v129_v28  ;;  %v130_v57 = vand.u32 4294901760, %v129_v28 }
  0x8d   :  { %675 = vmatpush.msra.mxu2 %v1456_v12  ;;  %v471_v13 = vand.u32 4294901760, %v1316_v49 }
  0x8e   :  { %638 = vmatpush.msra.mxu1 %v1045_v48  ;;  %327 = vmatmul.f32.vlgmr.msra.gmra.mxu3 %v130_v57  ;;  %v131_v37 = vsub.f32 %v129_v28, %v130_v57 }
  0x8f   :  { %679 = vmatpush.msra.mxu2 %v1457_v46  ;;  %742 = vmatpush.msra.mxu3 %v1036_v39  ;;  %v472_v42 = vsub.f32 %v1316_v49, %v471_v13 }
  0x90   :  { %640 = vmatpush.msra.mxu1 %v1063_v3  ;;  %v132_v60 = vand.u32 4294901760, %v131_v37 }
  0x91   :  { %683 = vmatpush.msra.mxu2 %v1458_v18  ;;  %744 = vmatpush.msra.mxu3 %v1043_v47  ;;  %v473_v39 = vand.u32 4294901760, %v472_v42 }
  0x92   :  { %800 = vmatmul.msk.f32.vlgmr.msrb.gmra.mxu1 %vm1300_vm12, %v874_v20  ;;  %133 = vmatmul.f32.vlgmr.msra.gmra.mxu0 %v132_v60 }
  0x93   :  { %642 = vmatpush.msra.mxu1 %v1079_v62  ;;  %581 = vmatpush.msra.mxu0 %v1054_v55 }
  0x94   :  { %687 = vmatpush.msra.mxu2 %v498_v58  ;;  %746 = vmatpush.msra.mxu3 %v1045_v48 }
  0x95   :  { %644 = vmatpush.msra.mxu1 %v1092_v40  ;;  %474 = vmatmul.f32.vlgmr.msrb.gmra.mxu2 %v473_v39 }
  0x96   :  { %584 = vmatpush.msra.mxu0 %v1061_v1  ;;  %691 = vmatpush.msra.mxu2 %v504_v32 }
  0x97   :  { %748 = vmatpush.msra.mxu3 %v1063_v3  ;;  %646 = vmatpush.msra.mxu1 %v1108_v33 }
  0x98   :  { %801 = vmatmul.msk.f32.vlgmr.msrb.gmra.mxu3 %vm1304_vm13, %v874_v20  ;;  %587 = vmatpush.msra.mxu0 %v1072_v31 }
  0x99   :  { %695 = vmatpush.msra.mxu2 %v510_v41  ;;  %750 = vmatpush.msra.mxu3 %v1079_v62 }
  0x9a   :  { %648 = vmatpush.msra.mxu1 %v1175_v8  ;;  %590 = vmatpush.msra.mxu0 %v1090_v52 }
  0x9b   :  { %699 = vmatpush.msra.mxu2 %v516_v34  ;;  %752 = vmatpush.msra.mxu3 %v1092_v40 }
  0x9c   :  { %650 = vmatpush.msra.mxu1 %v1213_v44  ;;  %799 = vmatmul.msk.f32.vlgmr.msrb.gmra.mxu0 %vm1300_vm12, %v874_v20 }
  0x9d   :  { %593 = vmatpush.msra.mxu0 %v1106_v43  ;;  %703 = vmatpush.msra.mxu2 %v522_v50 }
  0x9e   :  { %754 = vmatpush.msra.mxu3 %v1108_v33  ;;  %652 = vmatpush.msra.mxu1 %v1220_v53 }
  0x9f   :  { %596 = vmatpush.msra.mxu0 %v1121_v5  ;;  %707 = vmatpush.msra.mxu2 %v528_v63 }
  0xa0   :  { %756 = vmatpush.msra.mxu3 %v1175_v8  ;;  %654 = vmatpush.msra.mxu1 %v1230_v2 }
  0xa1   :  { %599 = vmatpush.msra.mxu0 %v1134_v7  ;;  %711 = vmatpush.msra.mxu2 %v534_v38 }
  0xa2   :  { %758 = vmatpush.msra.mxu3 %v1213_v44  ;;  %656 = vmatpush.msra.mxu1 %v1240_v54 }
  0xa3   :  { %602 = vmatpush.msra.mxu0 %v1216_v45  ;;  %715 = vmatpush.msra.mxu2 %v540_v51 }
  0xa4   :  { %760 = vmatpush.msra.mxu3 %v1220_v53  ;;  %658 = vmatpush.msra.mxu1 %v1250_v35 }
  0xa5   :  { %605 = vmatpush.msra.mxu0 %v1223_v56  ;;  %719 = vmatpush.msra.mxu2 %v546_v29 }
  0xa6   :  { %762 = vmatpush.msra.mxu3 %v1230_v2  ;;  %660 = vmatpush.msra.mxu1 %v1263_v22 }
  0xa7   :  { %608 = vmatpush.msra.mxu0 %v1233_v6  ;;  %723 = vmatpush.msra.mxu2 %v552_v9 }
  0xa8   :  { %764 = vmatpush.msra.mxu3 %v1240_v54  ;;  %662 = vmatpush.msra.mxu1 %v1270_v21 }
  0xa9   :  { %611 = vmatpush.msra.mxu0 %v1243_v0  ;;  %727 = vmatpush.msra.mxu2 %v558_v26 }
  0xaa   :  { %766 = vmatpush.msra.mxu3 %v1250_v35  ;;  %664 = vmatpush.msra.mxu1 %v1280_v16 }
  0xab   :  { %614 = vmatpush.msra.mxu0 %v1253_v11  ;;  %668 = vmatmul.f32.vlgmr.msra.gmra.mxu1 %v471_v13 }
  0xac   :  { %731 = vmatpush.msra.mxu2 %v564_v30  ;;  %768 = vmatpush.msra.mxu3 %v1263_v22 }
  0xad   :  { %617 = vmatpush.msra.mxu0 %v1266_v25 }
  0xae   :  { %735 = vmatpush.msra.mxu2 %v570_v59  ;;  %770 = vmatpush.msra.mxu3 %v1270_v21 }
  0xaf   :  { %802 = vmatmul.msk.f32.vlgmr.msra.gmra.mxu2 %vm1304_vm13, %v874_v20  ;;  %620 = vmatpush.msra.mxu0 %v1273_v10 }
  0xb0   :  { %772 = vmatpush.msra.mxu3 %v1280_v16 }
  0xb1   :  { %803 = vmatmul.msk.f32.vlgmr.msra.gmra.mxu3 %vm1304_vm13, %v874_v20  ;;  %623 = vmatpush.msra.mxu0 %v1283_v17 }
  0xb3   :  { %626 = vmatpush.msra.mxu0 %v1291_v36 }
  0xb4   :  { %629 = vmatmul.f32.vlgmr.msra.gmra.mxu0 %v1316_v49 }
 0x106   :  { %v235_v40 = vpop.f32.mrf.mxu1 }
 0x10f   :  { %v134_v33 = vpop.f32.mrf.mxu0  ;;  %v289_v52 = vpop.f32.mrf.mxu2 }
 0x110   :  { %v236_v43 = vadd.f32 %v235_v40, %v134_v33  ;;  %v434_v1 = vpop.f32.mrf.mxu1 }
 0x111   :  { %v328_v5 = vpop.f32.mrf.mxu3 }
 0x112   :  { %v290_v62 = vadd.f32 %v289_v52, %v236_v43 }
 0x114   :  { %v329_v48 = vadd.f32 %v328_v5, %v290_v62 }
 0x118   :  { %v475_v31 = vpop.f32.mrf.mxu2 }
 0x119   :  { %v397_v47 = vpop.f32.mrf.mxu0 }
 0x11a   :  { %v398_v55 = vadd.f32 %v397_v47, %v329_v48 }
 0x11b   :  { %v576_v58 = vpop.f32.mrf.mxu3 }
 0x11c   :  { %v435_v3 = vadd.f32 %v434_v1, %v398_v55 }
 0x11e   :  { %v476_v7 = vadd.f32 %v475_v31, %v435_v3 }
 0x120   :  { %v577_v32 = vadd.f32 %v576_v58, %v476_v7 }
 0x128   :  { %v669_v8 = vpop.f32.mrf.mxu1 }
 0x131   :  { %v630_v41 = vpop.f32.mrf.mxu0 }
 0x132   :  { %v631_v34 = vadd.f32 %v630_v41, %v577_v32  ;;  %v738_v45 = vpop.f32.mrf.mxu2 }
 0x134   :  { %v670_v44 = vadd.f32 %v669_v8, %v631_v34  ;;  %v775_v53 = vpop.f32.mrf.mxu3 }
 0x136   :  { %v739_v50 = vadd.f32 %v738_v45, %v670_v44 }
 0x138   :  { %v776_v56 = vadd.f32 %v775_v53, %v739_v50 }
 0x13a   :  { %v778_v63 = vmul.f32 5.656854, %v776_v56 }
 0x13c   :  { %779 = vst [vmem:[#allocation3] sm:$0xff] %v778_v63 }
 0x13d   :  { %790 = dma.vmem_to_hbm [thread:$0]  %s786_s1, 128, %s788_s18, [#allocation4]  }
 0x13e   :  { %867 = dma.done.wait [#allocation4], 128  }
 0x13f   :  { %868 = vsyncadd [#allocation4], 4294967168 }
 0x140   :  { %795 = vsyncpa [#allocation4], 1 }

</bundles_post_ra>
